<compile_context>
chip_gen: v6e
topology: v6e:2x2x1
jax: 0.10.0
libtpu: 0.0.40
codegen_flags: <defaults>
</compile_context>

<pallas_src>
import jax
import jax.numpy as jnp
from jax.experimental import pallas as pl
from jax.experimental.pallas import tpu as pltpu

D_IN, D_H1, D_H2, D_OUT = 20 * 28 * 1, 120, 84, 9
# Hidden dims lane-padded to 128 (zero-filled; exactly preserves the math).
D_H1_P, D_H2_P = 128, 128


def _round_up(x, m):
    return ((x + m - 1) // m) * m


def _choose_tb(B, tb_max=512):
    """Pick a batch tile (multiple of 8) that minimizes padding; ensure >=2 grid
    steps for large batches so both v7x TensorCores get work."""
    B8 = _round_up(B, 8)
    if B8 <= tb_max:
        tb = B8
    else:
        candidates = []
        c = tb_max
        while c >= 256:
            candidates.append(c)
            c //= 2
        if not candidates:
            candidates = [tb_max]
        # minimize batch padding; ties -> larger tile (fewer grid steps).
        tb = min(candidates, key=lambda t: (_round_up(B, t) - B, -t))
    Bp = _round_up(B, tb)
    if Bp // tb == 1 and Bp >= 512 and (Bp // 2) % 8 == 0:
        tb = Bp // 2  # split a single full-batch tile across both TCs (v7x)
    return tb, Bp


def mlp_kernel(x_ref, w1_ref, b1_ref, w2_ref, b2_ref, w3_ref, b3_ref, o_ref):
    # x arrives f32 straight from HBM; cast to the matmul dtype in-kernel
    # (free VPU work hidden under the x DMA). All GEMMs accumulate in f32 on
    # the MXU; bias-add / ReLU stay f32 (v5e has no bf16 VPU).
    x = x_ref[...].astype(w1_ref.dtype)
    h1 = jnp.dot(x, w1_ref[...], preferred_element_type=jnp.float32) + b1_ref[...]
    h1 = jnp.maximum(h1, 0.0)
    h2 = jnp.dot(h1.astype(w2_ref.dtype), w2_ref[...],
                 preferred_element_type=jnp.float32) + b2_ref[...]
    h2 = jnp.maximum(h2, 0.0)
    out = jnp.dot(h2.astype(w3_ref.dtype), w3_ref[...],
                  preferred_element_type=jnp.float32) + b3_ref[...]
    o_ref[...] = out.astype(o_ref.dtype)


def prepare_params(params, *, use_bf16=True):
    """One-time pad + cast of the weights/biases (do NOT call per forward)."""
    w1, b1, w2, b2, w3, b3 = params
    mm_dtype = jnp.bfloat16 if use_bf16 else jnp.float32
    w1_p = jnp.pad(w1, ((0, 0), (0, D_H1_P - D_H1))).astype(mm_dtype)       # (560,128)
    b1_p = jnp.pad(b1, ((0, 0), (0, D_H1_P - D_H1)))                        # (1,128) f32
    w2_p = jnp.pad(w2, ((0, D_H1_P - D_H1), (0, D_H2_P - D_H2))).astype(mm_dtype)  # (128,128)
    b2_p = jnp.pad(b2, ((0, 0), (0, D_H2_P - D_H2)))                        # (1,128) f32
    w3_p = jnp.pad(w3, ((0, D_H2_P - D_H2), (0, 0))).astype(mm_dtype)       # (128,9)
    b3_p = b3                                                               # (1,9)  f32
    return (w1_p, b1_p, w2_p, b2_p, w3_p, b3_p)


def mlp_forward(x, prepared_params, *, tb=512):
    """x: (B, 20, 28, 1) float32, prepared_params from prepare_params -> (B, 9) f32."""
    w1_p, b1_p, w2_p, b2_p, w3_p, b3_p = prepared_params
    B = x.shape[0]
    x_flat = x.reshape(B, D_IN)          # flatten only (no pad / no cast here)

    TB, Bp = _choose_tb(B, tb)
    if Bp != B:
        x_flat = jnp.pad(x_flat, ((0, Bp - B), (0, 0)))

    grid = (Bp // TB,)
    resident = lambda shape: pl.BlockSpec(shape, lambda i: (0, 0))  # VMEM-resident

    w_bytes = jnp.dtype(w1_p.dtype).itemsize
    cost = pl.CostEstimate(
        flops=2 * Bp * (D_IN * D_H1_P + D_H1_P * D_H2_P + D_H2_P * D_OUT),
        transcendentals=0,
        bytes_accessed=(Bp * D_IN * 4                      # x read (f32)
                        + Bp * D_OUT * 4                   # output write (f32, 9-wide)
                        + (D_IN * D_H1_P + D_H1_P * D_H2_P + D_H2_P * D_OUT) * w_bytes
                        + (D_H1_P + D_H2_P + D_OUT) * 4),  # biases
    )

    out = pl.pallas_call(
        mlp_kernel,
        out_shape=jax.ShapeDtypeStruct((Bp, D_OUT), jnp.float32),
        grid=grid,
        in_specs=[
            pl.BlockSpec((TB, D_IN), lambda i: (i, 0)),   # x: streamed per batch tile
            resident((D_IN, D_H1_P)),                     # w1
            resident((1, D_H1_P)),                        # b1
            resident((D_H1_P, D_H2_P)),                   # w2
            resident((1, D_H2_P)),                        # b2
            resident((D_H2_P, D_OUT)),                    # w3 (true 9-wide output)
            resident((1, D_OUT)),                         # b3
        ],
        out_specs=pl.BlockSpec((TB, D_OUT), lambda i: (i, 0)),
        compiler_params=pltpu.CompilerParams(
            dimension_semantics=("parallel",),
            vmem_limit_bytes=32 * 1024 * 1024,  # plenty for TB<=512 tiles; v7x-safe
        ),
        cost_estimate=cost,
    )(x_flat, w1_p, b1_p, w2_p, b2_p, w3_p, b3_p)

    return out[:B] if Bp != B else out


def init_params(key):
    """Deterministic init mirroring nn.Linear's U(-1/sqrt(fan_in), 1/sqrt(fan_in))."""
    ks = jax.random.split(key, 6)

    def linear(kw, kb, fan_in, fan_out):
        bound = 1.0 / jnp.sqrt(fan_in)
        w = jax.random.uniform(kw, (fan_in, fan_out), jnp.float32, -bound, bound)
        b = jax.random.uniform(kb, (1, fan_out), jnp.float32, -bound, bound)
        return w, b

    w1, b1 = linear(ks[0], ks[1], D_IN, D_H1)
    w2, b2 = linear(ks[2], ks[3], D_H1, D_H2)
    w3, b3 = linear(ks[4], ks[5], D_H2, D_OUT)
    return (w1, b1, w2, b2, w3, b3)


def mlp_reference(x, params):
    w1, b1, w2, b2, w3, b3 = params
    h = x.reshape(x.shape[0], D_IN)
    h = jnp.maximum(h @ w1 + b1, 0.0)
    h = jnp.maximum(h @ w2 + b2, 0.0)
    return h @ w3 + b3


if __name__ == "__main__":
    key = jax.random.PRNGKey(0)
    k_x, k_p = jax.random.split(key)

    B = 2
    x = jax.random.normal(k_x, (B, 20, 28, 1), dtype=jnp.float32)
    params = init_params(k_p)
    ref = mlp_reference(x, params)

    # f32 path: exact semantics of the PyTorch module (zero padding only).
    prepped_f32 = prepare_params(params, use_bf16=False)
    out_f32 = jax.block_until_ready(mlp_forward(x, prepped_f32))
    assert out_f32.shape == (B, D_OUT)
    assert jnp.allclose(out_f32, ref, atol=1e-4, rtol=1e-4)

    # bf16 matmul path (activations+weights quantized to bf16, f32 accumulation).
    prepped_bf16 = prepare_params(params, use_bf16=True)
    out_bf16 = jax.block_until_ready(mlp_forward(x, prepped_bf16))
    assert out_bf16.shape == (B, D_OUT)
    assert jnp.allclose(out_bf16, ref, atol=5e-2, rtol=5e-2)

    print("KERNEL_OK")
</pallas_src>

<mosaic_0001>
module attributes {stable_mosaic.version = 11 : i64} {
  func.func @mlp_kernel(%arg0: i32, %arg1: memref<8x560xf32, #tpu.memory_space<vmem>>, %arg2: memref<560x128xf32, #tpu.memory_space<vmem>>, %arg3: memref<1x128xf32, #tpu.memory_space<vmem>>, %arg4: memref<128x128xf32, #tpu.memory_space<vmem>>, %arg5: memref<1x128xf32, #tpu.memory_space<vmem>>, %arg6: memref<128x9xf32, #tpu.memory_space<vmem>>, %arg7: memref<1x9xf32, #tpu.memory_space<vmem>>, %arg8: memref<8x9xf32, #tpu.memory_space<vmem>>) attributes {dimension_semantics = [#tpu.dimension_semantics<parallel>], iteration_bounds = array<i64: 1>, scalar_prefetch = 0 : i64, scratch_operands = 0 : i64, tpu.core_type = #tpu.core_type<tc>, window_params = [{transform_indices = @transform_0, window_bounds = array<i64: 8, 560>}, {pipeline_mode = #tpu.pipeline_mode<synchronous>, transform_indices = @transform_1, window_bounds = array<i64: 560, 128>}, {pipeline_mode = #tpu.pipeline_mode<synchronous>, transform_indices = @transform_2, window_bounds = array<i64: 1, 128>}, {pipeline_mode = #tpu.pipeline_mode<synchronous>, transform_indices = @transform_3, window_bounds = array<i64: 128, 128>}, {pipeline_mode = #tpu.pipeline_mode<synchronous>, transform_indices = @transform_4, window_bounds = array<i64: 1, 128>}, {pipeline_mode = #tpu.pipeline_mode<synchronous>, transform_indices = @transform_5, window_bounds = array<i64: 128, 9>}, {pipeline_mode = #tpu.pipeline_mode<synchronous>, transform_indices = @transform_6, window_bounds = array<i64: 1, 9>}, {transform_indices = @transform_7, window_bounds = array<i64: 8, 9>}]} {
    %c0 = arith.constant 0 : index
    %c0_0 = arith.constant 0 : index
    %0 = vector.load %arg1[%c0, %c0_0] : memref<8x560xf32, #tpu.memory_space<vmem>>, vector<8x560xf32>
    %c0_1 = arith.constant 0 : index
    %c0_2 = arith.constant 0 : index
    %1 = vector.load %arg2[%c0_1, %c0_2] : memref<560x128xf32, #tpu.memory_space<vmem>>, vector<560x128xf32>
    %cst = arith.constant dense<0.000000e+00> : vector<8x128xf32>
    %2 = tpu.matmul %0, %1, %cst {dimension_numbers = #tpu.dot_dimension_numbers<[1], [0], [0], [1], [0, 0, 1, 1], [], []>} : vector<8x560xf32>, vector<560x128xf32>, vector<8x128xf32> -> vector<8x128xf32>
    %c0_3 = arith.constant 0 : index
    %c0_4 = arith.constant 0 : index
    %3 = vector.load %arg3[%c0_3, %c0_4] : memref<1x128xf32, #tpu.memory_space<vmem>>, vector<1x128xf32>
    %4 = vector.broadcast %3 : vector<1x128xf32> to vector<8x128xf32>
    %5 = arith.addf %2, %4 : vector<8x128xf32>
    %cst_5 = arith.constant 0.000000e+00 : f32
    %6 = vector.broadcast %cst_5 : f32 to vector<8x128xf32>
    %7 = arith.maximumf %5, %6 : vector<8x128xf32>
    %c0_6 = arith.constant 0 : index
    %c0_7 = arith.constant 0 : index
    %8 = vector.load %arg4[%c0_6, %c0_7] : memref<128x128xf32, #tpu.memory_space<vmem>>, vector<128x128xf32>
    %cst_8 = arith.constant dense<0.000000e+00> : vector<8x128xf32>
    %9 = tpu.matmul %7, %8, %cst_8 {dimension_numbers = #tpu.dot_dimension_numbers<[1], [0], [0], [1], [0, 0, 1, 1], [], []>} : vector<8x128xf32>, vector<128x128xf32>, vector<8x128xf32> -> vector<8x128xf32>
    %c0_9 = arith.constant 0 : index
    %c0_10 = arith.constant 0 : index
    %10 = vector.load %arg5[%c0_9, %c0_10] : memref<1x128xf32, #tpu.memory_space<vmem>>, vector<1x128xf32>
    %11 = vector.broadcast %10 : vector<1x128xf32> to vector<8x128xf32>
    %12 = arith.addf %9, %11 : vector<8x128xf32>
    %cst_11 = arith.constant 0.000000e+00 : f32
    %13 = vector.broadcast %cst_11 : f32 to vector<8x128xf32>
    %14 = arith.maximumf %12, %13 : vector<8x128xf32>
    %c0_12 = arith.constant 0 : index
    %c0_13 = arith.constant 0 : index
    %15 = vector.load %arg6[%c0_12, %c0_13] : memref<128x9xf32, #tpu.memory_space<vmem>>, vector<128x9xf32>
    %cst_14 = arith.constant dense<0.000000e+00> : vector<8x9xf32>
    %16 = tpu.matmul %14, %15, %cst_14 {dimension_numbers = #tpu.dot_dimension_numbers<[1], [0], [0], [1], [0, 0, 1, 1], [], []>} : vector<8x128xf32>, vector<128x9xf32>, vector<8x9xf32> -> vector<8x9xf32>
    %c0_15 = arith.constant 0 : index
    %c0_16 = arith.constant 0 : index
    %17 = vector.load %arg7[%c0_15, %c0_16] : memref<1x9xf32, #tpu.memory_space<vmem>>, vector<1x9xf32>
    %18 = vector.broadcast %17 : vector<1x9xf32> to vector<8x9xf32>
    %19 = arith.addf %16, %18 : vector<8x9xf32>
    %c0_17 = arith.constant 0 : index
    %c0_18 = arith.constant 0 : index
    %20 = vector.load %arg8[%c0_17, %c0_18] : memref<8x9xf32, #tpu.memory_space<vmem>>, vector<8x9xf32>
    tpu.vector_store %arg8[%c0_17, %c0_18], %19 {strides = array<i32>} : memref<8x9xf32, #tpu.memory_space<vmem>>, vector<8x9xf32>,
    return
  }
  func.func @transform_0(%arg0: i32) -> (i32, i32) {
    %c0_i32 = arith.constant 0 : i32
    %c0_i32_0 = arith.constant 0 : i32
    return %arg0, %c0_i32 : i32, i32
  }
  func.func @transform_1(%arg0: i32) -> (i32, i32) {
    %c0_i32 = arith.constant 0 : i32
    %c0_i32_0 = arith.constant 0 : i32
    %c0_i32_1 = arith.constant 0 : i32
    return %c0_i32, %c0_i32_0 : i32, i32
  }
  func.func @transform_2(%arg0: i32) -> (i32, i32) {
    %c0_i32 = arith.constant 0 : i32
    %c0_i32_0 = arith.constant 0 : i32
    %c0_i32_1 = arith.constant 0 : i32
    return %c0_i32, %c0_i32_0 : i32, i32
  }
  func.func @transform_3(%arg0: i32) -> (i32, i32) {
    %c0_i32 = arith.constant 0 : i32
    %c0_i32_0 = arith.constant 0 : i32
    %c0_i32_1 = arith.constant 0 : i32
    return %c0_i32, %c0_i32_0 : i32, i32
  }
  func.func @transform_4(%arg0: i32) -> (i32, i32) {
    %c0_i32 = arith.constant 0 : i32
    %c0_i32_0 = arith.constant 0 : i32
    %c0_i32_1 = arith.constant 0 : i32
    return %c0_i32, %c0_i32_0 : i32, i32
  }
  func.func @transform_5(%arg0: i32) -> (i32, i32) {
    %c0_i32 = arith.constant 0 : i32
    %c0_i32_0 = arith.constant 0 : i32
    %c0_i32_1 = arith.constant 0 : i32
    return %c0_i32, %c0_i32_0 : i32, i32
  }
  func.func @transform_6(%arg0: i32) -> (i32, i32) {
    %c0_i32 = arith.constant 0 : i32
    %c0_i32_0 = arith.constant 0 : i32
    %c0_i32_1 = arith.constant 0 : i32
    return %c0_i32, %c0_i32_0 : i32, i32
  }
  func.func @transform_7(%arg0: i32) -> (i32, i32) {
    %c0_i32 = arith.constant 0 : i32
    %c0_i32_0 = arith.constant 0 : i32
    return %arg0, %c0_i32 : i32, i32
  }
}

</mosaic_0001>

<bundles_post_ra>
// kernel: tpu_custom_call.1
= control target key start
LH: loop header
LB: loop body
LE: loop exit
PB: predicated region body
PF: predicated region fallthrough
CT: control target
= control target key end

     0   :  { %12 = vsyncpa [#allocation3], 0  ;;  %s1033_s0 = inlined_call_operand.hbm [shape: f32[8,560], index: 0, kind: input, shape index: {}]   ;;  %s1034_s1 = inlined_call_operand.hbm [shape: f32[560,128], index: 1, kind: input, shape index: {}]   ;;  %s1035_s2 = inlined_call_operand.vmem [shape: f32[1,128], index: 2, kind: input, shape index: {}]   ;;  %s1036_s3 = inlined_call_operand.vmem [shape: f32[128,128], index: 3, kind: input, shape index: {}]   ;;  %s1037_s4 = inlined_call_operand.vmem [shape: f32[1,128], index: 4, kind: input, shape index: {}]   ;;  %s1038_s5 = inlined_call_operand.vmem [shape: f32[128,9], index: 5, kind: input, shape index: {}]   ;;  %s1039_s6 = inlined_call_operand.vmem [shape: f32[1,9], index: 6, kind: input, shape index: {}]   ;;  %s1040_s7 = inlined_call_operand.hbm [shape: f32[8,9], index: 7, kind: output, shape index: {}]  }
   0x1   :  { %13 = vsyncpa [#allocation6], 0 }
   0x2   :  { %14 = vsyncpa [#allocation4], 0  ;;  %s828_s24 = smov [#allocation2]   ;;  %s829_s26 = smov [#allocation5]  }
   0x3   :  { %s21_s25 = sshll.u32 %s828_s24, 4  ;;  %s30_s27 = sshll.u32 %s829_s26, 4  ;;  %s22_s25 = int_to_ptr.vmem [resolvable:$true] %s21_s25  ;;  %s31_s27 = int_to_ptr.vmem [resolvable:$true] %s30_s27 }
   0x4   :  { %s770_s28 = scalar_lea.vmem %s22_s25, 640  ;;  %p775_p1 = scmp.lt.s32.totalorder %s22_s25, %s22_s25 }
   0x5   :  { %p771_p0 = scmp.ne.s32.totalorder %s22_s25, %s770_s28  ;;  %p776_p2 = scmp.lt.s32.totalorder %s770_s28, %s770_s28 }
   0x7   :  { %p777_p3 = por %p776_p2, %p775_p1 }
   0x9   :  { %p778_p4 = pnand %p777_p3, %p771_p0 }
   0xb   :  { %781 = shalt.err (!%p778_p4)
}
   0xc   :  { %24 = dma.hbm_to_vmem [thread:$0]  %s1033_s0, 640, %s22_s25, [#allocation3]  }
   0xd   :  { %s790_s8 = scalar_lea.vmem %s31_s27, 8960  ;;  %p795_p6 = scmp.lt.s32.totalorder %s31_s27, %s31_s27 }
   0xe   :  { %p791_p5 = scmp.ne.s32.totalorder %s31_s27, %s790_s8  ;;  %p796_p7 = scmp.lt.s32.totalorder %s790_s8, %s790_s8 }
  0x10   :  { %p797_p8 = por %p796_p7, %p795_p6 }
  0x12   :  { %p798_p9 = pnand %p797_p8, %p791_p5 }
  0x14   :  { %801 = shalt.err (!%p798_p9)
}
  0x15   :  { %s830_s9 = smov 128   ;;  %s831_s10 = smov 8  }
  0x16   :  { %36 = dma.hbm_to_vmem [thread:$0]  %s1034_s1, 8960, %s31_s27, [#allocation6], %s830_s9, %s830_s9, %s831_s10  }
  0x17   :  { %822 = dma.done.wait [#allocation3], 640  }
  0x18   :  { %823 = vsyncadd [#allocation3], 4294966656 }
  0x19   :  { %824 = dma.done.wait [#allocation6], 8960  }
  0x1a   :  { %825 = vsyncadd [#allocation6], 4294958336  ;;  %v89_v0 = vld [vmem:[#allocation5 + $0xf8] sm:$0xff]  ;;  %v88_v2 = vld [vmem:[#allocation5 + $0xf0] sm:$0xff]  ;;  %vm833_vm0 = vmmov 0   ;;  %vm135_vm1 = vcmask 392192  }
  0x1b   :  { %v73_v1 = vld [vmem:[#allocation5 + $0x78] sm:$0xff]  ;;  %559 = vmatprep.subr.mxu0 %v89_v0  ;;  %v72_v4 = vld [vmem:[#allocation5 + $0x70] sm:$0xff]  ;;  %v87_v6 = vld [vmem:[#allocation5 + $0xe8] sm:$0xff]  ;;  %s834_s28 = smov [#allocation7]   ;;  %vm537_vm2 = vcmask 72704  }
  0x1c   :  { %v121_v3 = vld [vmem:[#allocation5 + $0x1f8] sm:$0xff]  ;;  %560 = vmatpush3.msra.mxu0 %v73_v1  ;;  %v120_v7 = vld [vmem:[#allocation5 + $0x1f0] sm:$0xff]  ;;  %v71_v8 = vld [vmem:[#allocation5 + $0x68] sm:$0xff]  ;;  %s545_s29 = sshll.u32 %s834_s28, 4  ;;  %s546_s29 = int_to_ptr.vmem [resolvable:$true] %s545_s29 }
  0x1d   :  { %v105_v5 = vld [vmem:[#allocation5 + $0x178] sm:$0xff]  ;;  %594 = vmatprep.subr.mxu1 %v121_v3  ;;  %561 = vmatprep.subr.mxu0 %v88_v2  ;;  %v104_v9 = vld [vmem:[#allocation5 + $0x170] sm:$0xff]  ;;  %v119_v10 = vld [vmem:[#allocation5 + $0x1e8] sm:$0xff]  ;;  %p807_p11 = scmp.lt.s32.totalorder %s546_s29, %s546_s29 }
  0x1e   :  { %595 = vmatpush3.msra.mxu1 %v105_v5  ;;  %562 = vmatpush3.msra.mxu0 %v72_v4  ;;  %v86_v11 = vld [vmem:[#allocation5 + $0xe0] sm:$0xff]  ;;  %v103_v12 = vld [vmem:[#allocation5 + $0x168] sm:$0xff]  ;;  %v85_v15 = vld [vmem:[#allocation5 + $0xd8] sm:$0xff]  ;;  %v832_v5 = vmov 0.0  }
  0x1f   :  { %596 = vmatprep.subr.mxu1 %v120_v7  ;;  %563 = vmatprep.subr.mxu0 %v87_v6  ;;  %v70_v13 = vld [vmem:[#allocation5 + $0x60] sm:$0xff]  ;;  %v69_v17 = vld [vmem:[#allocation5 + $0x58] sm:$0xff]  ;;  %v84_v19 = vld [vmem:[#allocation5 + $0xd0] sm:$0xff] }
  0x20   :  { %597 = vmatpush3.msra.mxu1 %v104_v9  ;;  %v118_v14 = vld [vmem:[#allocation5 + $0x1e0] sm:$0xff]  ;;  %564 = vmatpush3.msra.mxu0 %v71_v8  ;;  %v117_v18 = vld [vmem:[#allocation5 + $0x1d8] sm:$0xff]  ;;  %v68_v21 = vld [vmem:[#allocation5 + $0x50] sm:$0xff] }
  0x21   :  { %598 = vmatprep.subr.mxu1 %v119_v10  ;;  %v102_v16 = vld [vmem:[#allocation5 + $0x160] sm:$0xff]  ;;  %565 = vmatprep.subr.mxu0 %v86_v11  ;;  %v101_v20 = vld [vmem:[#allocation5 + $0x158] sm:$0xff]  ;;  %v116_v22 = vld [vmem:[#allocation5 + $0x1d0] sm:$0xff] }
  0x22   :  { %599 = vmatpush3.msra.mxu1 %v103_v12  ;;  %566 = vmatpush3.msra.mxu0 %v70_v13  ;;  %v83_v23 = vld [vmem:[#allocation5 + $0xc8] sm:$0xff]  ;;  %v100_v24 = vld [vmem:[#allocation5 + $0x150] sm:$0xff]  ;;  %v82_v27 = vld [vmem:[#allocation5 + $0xc0] sm:$0xff] }
  0x23   :  { %600 = vmatprep.subr.mxu1 %v118_v14  ;;  %567 = vmatprep.subr.mxu0 %v85_v15  ;;  %v67_v25 = vld [vmem:[#allocation5 + $0x48] sm:$0xff]  ;;  %v66_v29 = vld [vmem:[#allocation5 + $0x40] sm:$0xff]  ;;  %v81_v31 = vld [vmem:[#allocation5 + $0xb8] sm:$0xff] }
  0x24   :  { %601 = vmatpush3.msra.mxu1 %v102_v16  ;;  %568 = vmatpush3.msra.mxu0 %v69_v17  ;;  %v115_v26 = vld [vmem:[#allocation5 + $0x1c8] sm:$0xff]  ;;  %v114_v30 = vld [vmem:[#allocation5 + $0x1c0] sm:$0xff]  ;;  %v65_v33 = vld [vmem:[#allocation5 + $0x38] sm:$0xff] }
  0x25   :  { %602 = vmatprep.subr.mxu1 %v117_v18  ;;  %569 = vmatprep.subr.mxu0 %v84_v19  ;;  %v99_v28 = vld [vmem:[#allocation5 + $0x148] sm:$0xff]  ;;  %v98_v32 = vld [vmem:[#allocation5 + $0x140] sm:$0xff]  ;;  %v113_v34 = vld [vmem:[#allocation5 + $0x1b8] sm:$0xff] }
  0x26   :  { %603 = vmatpush3.msra.mxu1 %v101_v20  ;;  %570 = vmatpush3.msra.mxu0 %v68_v21  ;;  %v80_v35 = vld [vmem:[#allocation5 + $0xb0] sm:$0xff]  ;;  %v97_v36 = vld [vmem:[#allocation5 + $0x138] sm:$0xff]  ;;  %v79_v39 = vld [vmem:[#allocation5 + $0xa8] sm:$0xff] }
  0x27   :  { %604 = vmatprep.subr.mxu1 %v116_v22  ;;  %571 = vmatprep.subr.mxu0 %v83_v23  ;;  %v64_v37 = vld [vmem:[#allocation5 + $0x30] sm:$0xff]  ;;  %v63_v41 = vld [vmem:[#allocation5 + $0x28] sm:$0xff]  ;;  %v78_v43 = vld [vmem:[#allocation5 + $0xa0] sm:$0xff] }
  0x28   :  { %605 = vmatpush3.msra.mxu1 %v100_v24  ;;  %572 = vmatpush3.msra.mxu0 %v67_v25  ;;  %v112_v38 = vld [vmem:[#allocation5 + $0x1b0] sm:$0xff]  ;;  %v111_v42 = vld [vmem:[#allocation5 + $0x1a8] sm:$0xff]  ;;  %v62_v45 = vld [vmem:[#allocation5 + $0x20] sm:$0xff] }
  0x29   :  { %606 = vmatprep.subr.mxu1 %v115_v26  ;;  %573 = vmatprep.subr.mxu0 %v82_v27  ;;  %v96_v40 = vld [vmem:[#allocation5 + $0x130] sm:$0xff]  ;;  %v95_v44 = vld [vmem:[#allocation5 + $0x128] sm:$0xff]  ;;  %v110_v46 = vld [vmem:[#allocation5 + $0x1a0] sm:$0xff] }
  0x2a   :  { %607 = vmatpush3.msra.mxu1 %v99_v28  ;;  %574 = vmatpush3.msra.mxu0 %v66_v29  ;;  %v77_v47 = vld [vmem:[#allocation5 + $0x98] sm:$0xff]  ;;  %v94_v48 = vld [vmem:[#allocation5 + $0x120] sm:$0xff]  ;;  %v76_v51 = vld [vmem:[#allocation5 + $0x90] sm:$0xff] }
  0x2b   :  { %608 = vmatprep.subr.mxu1 %v114_v30  ;;  %575 = vmatprep.subr.mxu0 %v81_v31  ;;  %v61_v49 = vld [vmem:[#allocation5 + $0x18] sm:$0xff]  ;;  %v60_v53 = vld [vmem:[#allocation5 + $0x10] sm:$0xff]  ;;  %v75_v55 = vld [vmem:[#allocation5 + $0x88] sm:$0xff] }
  0x2c   :  { %609 = vmatpush3.msra.mxu1 %v98_v32  ;;  %576 = vmatpush3.msra.mxu0 %v65_v33  ;;  %v109_v50 = vld [vmem:[#allocation5 + $0x198] sm:$0xff]  ;;  %v108_v54 = vld [vmem:[#allocation5 + $0x190] sm:$0xff]  ;;  %v59_v57 = vld [vmem:[#allocation5 + $0x8] sm:$0xff] }
  0x2d   :  { %610 = vmatprep.subr.mxu1 %v113_v34  ;;  %577 = vmatprep.subr.mxu0 %v80_v35  ;;  %v93_v52 = vld [vmem:[#allocation5 + $0x118] sm:$0xff]  ;;  %v92_v56 = vld [vmem:[#allocation5 + $0x110] sm:$0xff]  ;;  %v107_v58 = vld [vmem:[#allocation5 + $0x188] sm:$0xff] }
  0x2e   :  { %611 = vmatpush3.msra.mxu1 %v97_v36  ;;  %578 = vmatpush3.msra.mxu0 %v64_v37  ;;  %v74_v59 = vld [vmem:[#allocation5 + $0x80] sm:$0xff]  ;;  %v91_v62 = vld [vmem:[#allocation5 + $0x108] sm:$0xff]  ;;  %v53_v63 = vld [vmem:[#allocation2] sm:$0xff] }
  0x2f   :  { %612 = vmatprep.subr.mxu1 %v112_v38  ;;  %579 = vmatprep.subr.mxu0 %v79_v39  ;;  %v54_v60 = vld [vmem:[#allocation2 + $0x8] sm:$0xff]  ;;  %v56_v2 = vld [vmem:[#allocation2 + $0x18] sm:$0xff]  ;;  %v127_v3 = vld [vmem:[#allocation5 + $0x228] sm:$0xff] }
  0x30   :  { %613 = vmatpush3.msra.mxu1 %v96_v40  ;;  %580 = vmatpush3.msra.mxu0 %v63_v41  ;;  %v58_v61 = vld [vmem:[#allocation5] sm:$0xff]  ;;  %v55_v4 = vld [vmem:[#allocation2 + $0x10] sm:$0xff]  ;;  %v125_v7 = vld [vmem:[#allocation5 + $0x218] sm:$0xff] }
  0x31   :  { %614 = vmatprep.subr.mxu1 %v111_v42  ;;  %581 = vmatprep.subr.mxu0 %v78_v43  ;;  %v106_v0 = vld [vmem:[#allocation5 + $0x180] sm:$0xff]  ;;  %v365_v8 = vld [vmem:[%s1036_s3 + $0x78] sm:$0xff]  ;;  %v364_v10 = vld [vmem:[%s1036_s3 + $0x70] sm:$0xff] }
  0x32   :  { %615 = vmatpush3.msra.mxu1 %v95_v44  ;;  %582 = vmatpush3.msra.mxu0 %v62_v45  ;;  %v90_v1 = vld [vmem:[#allocation5 + $0x100] sm:$0xff]  ;;  %v124_v9 = vld [vmem:[#allocation5 + $0x210] sm:$0xff]  ;;  %v123_v11 = vld [vmem:[#allocation5 + $0x208] sm:$0xff] }
  0x33   :  { %616 = vmatprep.subr.mxu1 %v110_v46  ;;  %583 = vmatprep.subr.mxu0 %v77_v47  ;;  %v126_v6 = vld [vmem:[#allocation5 + $0x220] sm:$0xff]  ;;  %v362_v14 = vld [vmem:[%s1036_s3 + $0x60] sm:$0xff]  ;;  %v361_v16 = vld [vmem:[%s1036_s3 + $0x58] sm:$0xff] }
  0x34   :  { %617 = vmatpush3.msra.mxu1 %v94_v48  ;;  %584 = vmatpush3.msra.mxu0 %v61_v49  ;;  %v363_v12 = vld [vmem:[%s1036_s3 + $0x68] sm:$0xff]  ;;  %v57_v15 = vld [vmem:[#allocation2 + $0x20] sm:$0xff]  ;;  %v360_v17 = vld [vmem:[%s1036_s3 + $0x50] sm:$0xff] }
  0x35   :  { %618 = vmatprep.subr.mxu1 %v109_v50  ;;  %585 = vmatprep.subr.mxu0 %v76_v51  ;;  %v122_v13 = vld [vmem:[#allocation5 + $0x200] sm:$0xff]  ;;  %v358_v19 = vld [vmem:[%s1036_s3 + $0x40] sm:$0xff]  ;;  %v357_v20 = vld [vmem:[%s1036_s3 + $0x38] sm:$0xff] }
  0x36   :  { %619 = vmatpush3.msra.mxu1 %v93_v52  ;;  %586 = vmatpush3.msra.mxu0 %v60_v53  ;;  %v359_v18 = vld [vmem:[%s1036_s3 + $0x48] sm:$0xff]  ;;  %v356_v21 = vld [vmem:[%s1036_s3 + $0x30] sm:$0xff]  ;;  %v354_v23 = vld [vmem:[%s1036_s3 + $0x20] sm:$0xff] }
  0x37   :  { %620 = vmatprep.subr.mxu1 %v108_v54  ;;  %587 = vmatprep.subr.mxu0 %v75_v55  ;;  %v355_v22 = vld [vmem:[%s1036_s3 + $0x28] sm:$0xff]  ;;  %v353_v24 = vld [vmem:[%s1036_s3 + $0x18] sm:$0xff]  ;;  %v352_v25 = vld [vmem:[%s1036_s3 + $0x10] sm:$0xff] }
  0x38   :  { %621 = vmatpush3.msra.mxu1 %v92_v56  ;;  %588 = vmatpush3.msra.mxu0 %v59_v57  ;;  %v351_v26 = vld [vmem:[%s1036_s3 + $0x8] sm:$0xff]  ;;  %v350_v27 = vld [vmem:[%s1036_s3] sm:$0xff]  ;;  %v459_v28 = vld [vmem:[%s1038_s5 + $0x78] sm:$0xff] }
  0x39   :  { %622 = vmatprep.subr.mxu1 %v107_v58  ;;  %589 = vmatprep.subr.mxu0 %v74_v59  ;;  %v458_v29 = vld [vmem:[%s1038_s5 + $0x70] sm:$0xff]  ;;  %v457_v30 = vld [vmem:[%s1038_s5 + $0x68] sm:$0xff]  ;;  %v456_v31 = vld [vmem:[%s1038_s5 + $0x60] sm:$0xff] }
  0x3a   :  { %203 = vmatprep.mubr.f32.mxu0 %v54_v60  ;;  %590 = vmatpush3.msra.mxu0 %v58_v61  ;;  %v455_v32 = vld [vmem:[%s1038_s5 + $0x58] sm:$0xff]  ;;  %v454_v33 = vld [vmem:[%s1038_s5 + $0x50] sm:$0xff]  ;;  %v453_v34 = vld [vmem:[%s1038_s5 + $0x48] sm:$0xff] }
  0x3b   :  { %623 = vmatpush3.msra.mxu1 %v91_v62  ;;  %204 = vmatmul.mubr.f32.vlgmr.msra.gmra.mxu0 %v53_v63  ;;  %v452_v35 = vld [vmem:[%s1038_s5 + $0x40] sm:$0xff]  ;;  %v451_v36 = vld [vmem:[%s1038_s5 + $0x38] sm:$0xff]  ;;  %v450_v37 = vld [vmem:[%s1038_s5 + $0x30] sm:$0xff] }
  0x3c   :  { %624 = vmatprep.subr.mxu1 %v106_v0  ;;  %670 = vmatprep.subr.mxu0 %v832_v5  ;;  %v449_v38 = vld [vmem:[%s1038_s5 + $0x28] sm:$0xff]  ;;  %v448_v39 = vld [vmem:[%s1038_s5 + $0x20] sm:$0xff]  ;;  %v447_v40 = vld [vmem:[%s1038_s5 + $0x18] sm:$0xff] }
  0x3d   :  { %625 = vmatpush3.msra.mxu1 %v90_v1  ;;  %273 = vmatprep.mubr.f32.mxu1 %v56_v2  ;;  %v555_v45 = vld [vmem:[%s1035_s2] ss:$0 sm:$0xff]  ;;  %v446_v54 = vld [vmem:[%s1038_s5 + $0x10] sm:$0xff]  ;;  %v445_v55 = vld [vmem:[%s1038_s5 + $0x8] sm:$0xff] }
  0x3e   :  { %671 = vmatpush3.msra.mxu0 %v127_v3  ;;  %274 = vmatmul.mubr.f32.vlgmr.msra.gmra.mxu1 %v55_v4  ;;  %v444_v56 = vld [vmem:[%s1038_s5] sm:$0xff]  ;;  %s802_s5 = scalar_lea.vmem %s546_s29, 128 }
  0x3f   :  { %672 = vmatprep.subr.mxu0 %v832_v5  ;;  %682 = vmatprep.mubr.msk.f32.mxu0 %vm833_vm0, %v832_v5  ;;  %v557_v57 = vld [vmem:[%s1037_s4] ss:$0 sm:$0xff]  ;;  %p803_p10 = scmp.ne.s32.totalorder %s546_s29, %s802_s5  ;;  %p808_p12 = scmp.lt.s32.totalorder %s802_s5, %s802_s5 }
  0x40   :  { %673 = vmatpush3.msra.mxu0 %v126_v6  ;;  %685 = vmatprep.subr.mxu1 %v832_v5  ;;  %v558_v62 = vld [vmem:[%s1039_s6] ss:$0 sm:$0xff] }
  0x41   :  { %674 = vmatprep.subr.mxu0 %v832_v5  ;;  %686 = vmatpush3.msra.mxu1 %v365_v8  ;;  %p809_p13 = por %p808_p12, %p807_p11 }
  0x42   :  { %675 = vmatpush3.msra.mxu0 %v125_v7  ;;  %687 = vmatprep.subr.mxu1 %v832_v5 }
  0x43   :  { %676 = vmatprep.subr.mxu0 %v832_v5  ;;  %688 = vmatpush3.msra.mxu1 %v364_v10  ;;  %p810_p0 = pnand %p809_p13, %p803_p10 }
  0x44   :  { %677 = vmatpush3.msra.mxu0 %v124_v9  ;;  %689 = vmatprep.subr.mxu1 %v832_v5 }
  0x45   :  { %678 = vmatprep.subr.mxu0 %v832_v5  ;;  %690 = vmatpush3.msra.mxu1 %v363_v12 }
  0x46   :  { %679 = vmatpush3.msra.mxu0 %v123_v11  ;;  %691 = vmatprep.subr.mxu1 %v832_v5 }
  0x47   :  { %680 = vmatprep.subr.mxu0 %v832_v5  ;;  %692 = vmatpush3.msra.mxu1 %v362_v14 }
  0x48   :  { %681 = vmatpush3.msra.mxu0 %v122_v13  ;;  %693 = vmatprep.subr.mxu1 %v832_v5 }
  0x49   :  { %683 = vmatmul.mubr.msk.f32.vlgmr.msra.gmra.mxu0 %vm135_vm1, %v57_v15  ;;  %694 = vmatpush3.msra.mxu1 %v361_v16 }
  0x4a   :  { %717 = vmatprep.mubr.msk.f32.mxu1 %vm833_vm0, %v832_v5  ;;  %695 = vmatprep.subr.mxu1 %v832_v5 }
  0x4b   :  { %720 = vmatprep.subr.mxu0 %v832_v5  ;;  %696 = vmatpush3.msra.mxu1 %v360_v17 }
  0x4c   :  { %752 = vmatprep.mubr.msk.f32.mxu0 %vm833_vm0, %v832_v5  ;;  %697 = vmatprep.subr.mxu1 %v832_v5 }
  0x4d   :  { %698 = vmatpush3.msra.mxu1 %v359_v18  ;;  %721 = vmatpush3.msra.mxu0 %v459_v28 }
  0x4e   :  { %699 = vmatprep.subr.mxu1 %v832_v5  ;;  %722 = vmatprep.subr.mxu0 %v832_v5 }
  0x4f   :  { %700 = vmatpush3.msra.mxu1 %v358_v19  ;;  %723 = vmatpush3.msra.mxu0 %v458_v29 }
  0x50   :  { %701 = vmatprep.subr.mxu1 %v832_v5  ;;  %724 = vmatprep.subr.mxu0 %v832_v5 }
  0x51   :  { %702 = vmatpush3.msra.mxu1 %v357_v20  ;;  %725 = vmatpush3.msra.mxu0 %v457_v30 }
  0x52   :  { %703 = vmatprep.subr.mxu1 %v832_v5  ;;  %726 = vmatprep.subr.mxu0 %v832_v5 }
  0x53   :  { %704 = vmatpush3.msra.mxu1 %v356_v21  ;;  %727 = vmatpush3.msra.mxu0 %v456_v31 }
  0x54   :  { %705 = vmatprep.subr.mxu1 %v832_v5  ;;  %728 = vmatprep.subr.mxu0 %v832_v5 }
  0x55   :  { %706 = vmatpush3.msra.mxu1 %v355_v22  ;;  %729 = vmatpush3.msra.mxu0 %v455_v32 }
  0x56   :  { %707 = vmatprep.subr.mxu1 %v832_v5  ;;  %730 = vmatprep.subr.mxu0 %v832_v5 }
  0x57   :  { %708 = vmatpush3.msra.mxu1 %v354_v23  ;;  %731 = vmatpush3.msra.mxu0 %v454_v33 }
  0x58   :  { %709 = vmatprep.subr.mxu1 %v832_v5  ;;  %732 = vmatprep.subr.mxu0 %v832_v5 }
  0x59   :  { %710 = vmatpush3.msra.mxu1 %v353_v24  ;;  %733 = vmatpush3.msra.mxu0 %v453_v34 }
  0x5a   :  { %711 = vmatprep.subr.mxu1 %v832_v5  ;;  %734 = vmatprep.subr.mxu0 %v832_v5 }
  0x5b   :  { %712 = vmatpush3.msra.mxu1 %v352_v25  ;;  %735 = vmatpush3.msra.mxu0 %v452_v35 }
  0x5c   :  { %713 = vmatprep.subr.mxu1 %v832_v5  ;;  %736 = vmatprep.subr.mxu0 %v832_v5 }
  0x5d   :  { %714 = vmatpush3.msra.mxu1 %v351_v26  ;;  %737 = vmatpush3.msra.mxu0 %v451_v36 }
  0x5e   :  { %715 = vmatprep.subr.mxu1 %v832_v5  ;;  %738 = vmatprep.subr.mxu0 %v832_v5 }
  0x5f   :  { %716 = vmatpush3.msra.mxu1 %v350_v27  ;;  %739 = vmatpush3.msra.mxu0 %v450_v37 }
  0x60   :  { %740 = vmatprep.subr.mxu0 %v832_v5 }
  0x61   :  { %741 = vmatpush3.msra.mxu0 %v449_v38 }
  0x62   :  { %742 = vmatprep.subr.mxu0 %v832_v5 }
  0x63   :  { %743 = vmatpush3.msra.mxu0 %v448_v39 }
  0x64   :  { %744 = vmatprep.subr.mxu0 %v832_v5 }
  0x65   :  { %745 = vmatpush3.msra.mxu0 %v447_v40 }
  0x66   :  { %746 = vmatprep.subr.mxu0 %v832_v5 }
  0x67   :  { %747 = vmatpush3.msra.mxu0 %v446_v54 }
  0x68   :  { %748 = vmatprep.subr.mxu0 %v832_v5 }
  0x69   :  { %749 = vmatpush3.msra.mxu0 %v445_v55 }
  0x6a   :  { %750 = vmatprep.subr.mxu0 %v832_v5 }
  0x6b   :  { %751 = vmatpush3.msra.mxu0 %v444_v56 }
  0xfb   :  { %v591_v41 = vpop.f32.mrf.mxu0 }
  0xfd   :  { %v592_v42 = vpop.f32.mrf.mxu0 }
  0xfe   :  { %v626_v43 = vpop.f32.mrf.mxu1  ;;  %v593_v44 = vadd.f32 %v592_v42, %v591_v41 }
 0x100   :  { %v627_v46 = vpop.f32.mrf.mxu1  ;;  %v206_v47 = vadd.f32 %v593_v44, %v555_v45 }
 0x101   :  { %v628_v48 = vadd.f32 %v627_v46, %v626_v43 }
 0x103   :  { %v276_v49 = vadd.f32 %v628_v48, %v206_v47 }
 0x109   :  { %v345_v50 = vpop.f32.mrf.mxu0 }
 0x10a   :  { %v346_v51 = vadd.f32 %v345_v50, %v276_v49 }
 0x10b   :  { %v684_v52 = vpop.f32.mrf.mxu0 }
 0x10c   :  { %v349_v53 = vmax.f32 %v346_v51, 0.0 }
 0x10e   :  { %718 = vmatmul.mubr.f32.vlgmr.msra.gmra.mxu1 %v349_v53 }
 0x1ce   :  { %v439_v58 = vpop.f32.mrf.mxu1 }
 0x1cf   :  { %v440_v59 = vadd.f32 %v557_v57, %v439_v58 }
 0x1d0   :  { %v719_v60 = vpop.f32.mrf.mxu1 }
 0x1d1   :  { %v443_v61 = vmax.f32 %v440_v59, 0.0 }
 0x1d3   :  { %753 = vmatmul.mubr.f32.vlgmr.msra.gmra.mxu0 %v443_v61 }
 0x293   :  { %v533_v63 = vpop.f32.mrf.mxu0 }
 0x294   :  { %v534_v0 = vadd.f32 %v558_v62, %v533_v63 }
 0x295   :  { %v754_v1 = vpop.f32.mrf.mxu0 }
 0x296   :  { %538 = vst.msk [vmem:[#allocation7] sm:$0xff] %vm537_vm2, %v534_v0 }
 0x297   :  { %813 = shalt.err (!%p810_p0)
}
 0x298   :  { %548 = dma.vmem_to_hbm [thread:$0]  %s546_s29, 128, %s1040_s7, [#allocation4]  }
 0x299   :  { %826 = dma.done.wait [#allocation4], 128  }
 0x29a   :  { %827 = vsyncadd [#allocation4], 4294967168 }
 0x29b   :  { %552 = vsyncpa [#allocation3], 1 }
 0x29c   :  { %553 = vsyncpa [#allocation6], 1 }
 0x29d   :  { %554 = vsyncpa [#allocation4], 1 }

</bundles_post_ra>
